<compile_context>
chip_gen: v7x
topology: tpu7x:2x2x1
jax: 0.10.0
libtpu: 0.0.40
codegen_flags: <defaults>
</compile_context>

<pallas_src>
import functools
import numpy as np
import jax
import jax.numpy as jnp
from jax import lax
from jax.experimental import pallas as pl
from jax.experimental.pallas import tpu as pltpu

# -------------------- module hyper-parameters (from __init__) ----------------
NORMALIZE = True
ENERGY_RATIO = 1.0
LJR_RATIO = 1.0
LJR_POWER = 12
LJR_SCALE = 0.8

# element_energy table copied verbatim from the module __init__
ELEMENT_ENERGY = [-10000, -3.392726045, -0.00905951, -1.9089228666666667, -3.739412865,
  -6.679391770833334, -9.2286654925, -8.336494925, -4.947961005, -1.9114789675, -0.02593678,
  -1.3225252934482759, -1.60028005, -3.74557583, -5.42531803, -5.413302506666667,
  -4.136449866875, -1.84853666, -0.06880822, -1.110398947, -2.00559988, -6.332469105,
  -7.895492016666666, -9.08390607, -9.65304747, -9.162015292068965, -8.47002121,
  -7.108317795, -5.78013668, -4.09920667, -1.25974361, -3.0280960225, -4.623027855,
  -4.659118405, -3.49591147765625, -1.636946535, -0.05671467, -0.9805340725,
  -1.6894934533333332, -6.466471113333333, -8.54770063, -10.10130504, -10.84565011,
  -10.360638945, -9.27440254, -7.36430787, -5.17988181, -2.8325560033333335, -0.92288976,
  -2.75168373, -4.009571855, -4.12900124, -3.1433058933333338, -1.524012615, -0.03617417,
  -0.8954023720689656, -1.91897494, -4.936007105, -5.933089155, -4.780905755, -4.7681474325,
  -4.7505423225, -4.718586135, -10.2570018, -14.07612224, -4.6343661, -4.60678684,
  -4.58240887, -4.56771881, -4.475835423333334, 999, -4.52095052, -9.95718903, -11.85777763,
  -12.95813023, -12.444527185, -11.22736743, -8.83843418, -6.07113332, -3.273882,
  -0.303680365, -2.3626431466666666, -3.71264707, -3.89003431, -10000, -10000, -10000,
  -10000, -10000, -4.1211750075, -7.41385825, -9.51466466, -11.29141001, -12.94777968125,
  -14.26783833, -10000, -10000, -10000, -10000, -10000, -10000]

N_ELEMENTS = 100   # rows/cols of the synthetic lj_rmins table
LANES = 128        # TPU lane width
NUM_SPLITS = 2     # leading "parallel" grid axis (v7x megacore); serialized on v5e/v6e


# ------------------------------- Pallas kernel --------------------------------
def energy_kernel(pg_ref, rmins_ref, ew_ref, out_ref, acc_ref, *,
                  power, energy_ratio, ljr_ratio, normalize, tiles_per_split):
    c = pl.program_id(0)     # parallel split (one per TensorCore on v7x)
    t = pl.program_id(1)     # edge-row tile within this split (reduction axis)

    @pl.when(t == 0)
    def _():
        acc_ref[...] = jnp.zeros_like(acc_ref)

    tr = rmins_ref.shape[0]
    gl = acc_ref.shape[1]

    # ---- edge tile: LJ repulsion on a full (TR, 128) block (VPU, 8/8 sublanes)
    rmins = rmins_ref[...]                        # [TR, 128] f32 (padding = 0)
    ew = ew_ref[...]                              # [TR, 128] f32 (padding = 1)
    ratio = rmins / ew                            # exact f32 divide (see header note)
    # rep - 1 == where(rmin <= w, 0, (rmin/w)^power - 1); power is a static int so
    # ** lowers to integer_pow (a few VPU muls), not exp/log.
    rep_m1 = jnp.where(rmins <= ew, jnp.float32(0.0),
                       ratio ** power - jnp.float32(1.0))
    rowsum = jnp.sum(rep_m1, axis=1, keepdims=True)            # [TR, 1]

    # ---- segment sum: row r belongs to graph g iff start_g <= r < end_g
    # (row ranges are exact in f32 for any realistic row count < 2^24)
    base = (c * tiles_per_split + t) * tr
    rows = (base + lax.broadcasted_iota(jnp.int32, (tr, 1), 0)).astype(jnp.float32)
    gstart = pg_ref[3:4, :]                                     # [1, GL]
    gend = pg_ref[4:5, :]                                       # [1, GL]
    one_hot = jnp.logical_and(rows >= gstart, rows < gend)      # [TR, GL]
    contrib = jnp.where(one_hot, rowsum, jnp.float32(0.0))      # [TR, GL]
    # fold to 8 sublanes before the accumulator RMW: scratch traffic is O(8*GL),
    # independent of tile_rows.
    acc_ref[...] += contrib.reshape(tr // 8, 8, gl).sum(axis=0)

    # ---- finalize (once per split): per-graph mixing, one dense (8, GL) store
    @pl.when(t == pl.num_programs(1) - 1)
    def _():
        ljr = jnp.sum(acc_ref[...], axis=0, keepdims=True)      # [1, GL] (partial)
        pe = pg_ref[0:1, :]
        off = pg_ref[1:2, :]
        na = pg_ref[2:3, :]
        if normalize:
            pen = (pe + off) / na
        else:
            pen = pe
        pen_part = jnp.where(c == 0, pen, jnp.float32(0.0))     # pen only on split 0
        comb_part = (jnp.float32(energy_ratio) * pen_part
                     + jnp.float32(ljr_ratio) * ljr)
        slab = jnp.concatenate(
            [comb_part, pen_part, ljr, jnp.zeros((5, gl), jnp.float32)], axis=0)
        out_ref[...] = slab[jnp.newaxis]                        # single unmasked store


# --------------------------------- wrapper -------------------------------------
@functools.partial(jax.jit, static_argnames=("power", "energy_ratio", "ljr_ratio",
                                             "normalize", "tile_rows", "edges_sorted"))
def energy_forward(potential_energy, offsets, n_atoms, rmins_e, edge_weight,
                   edge_graph, *, power=LJR_POWER, energy_ratio=ENERGY_RATIO,
                   ljr_ratio=LJR_RATIO, normalize=NORMALIZE, tile_rows=256,
                   edges_sorted=True):
    """potential_energy/offsets/n_atoms: [G]; rmins_e/edge_weight: [E];
    edge_graph: [E] int (graph id of each edge, sorted per graph for PyG batches).
    Returns (combined, pe_norm, zeros, ljr), each [G, 1] float32."""
    G = potential_energy.shape[0]
    E = edge_weight.shape[0]
    GL = max(LANES, -(-G // LANES) * LANES)      # graphs, lane-dense (multiple of 128)

    # ---------- glue: regroup edges per graph into 128-lane rows ----------
    eg = edge_graph.astype(jnp.int32)
    counts = jnp.zeros((G,), jnp.int32).at[eg].add(1)
    rows_per_graph = (counts + (LANES - 1)) // LANES
    row_off = jnp.concatenate([jnp.zeros((1,), jnp.int32),
                               jnp.cumsum(rows_per_graph)])[:G]  # exclusive prefix
    edge_off = jnp.concatenate([jnp.zeros((1,), jnp.int32),
                                jnp.cumsum(counts)])[:G]

    # static worst case: each graph wastes at most one partial 128-lane row
    r_max = (E + LANES - 1) // LANES + G
    r_max8 = -(-r_max // 8) * 8
    tr = min(max(8, -(-tile_rows // 8) * 8), r_max8)             # multiple of 8
    rp = -(-r_max // (tr * NUM_SPLITS)) * (tr * NUM_SPLITS)
    tiles_per_split = rp // (tr * NUM_SPLITS)

    if edges_sorted:
        # PyG batches already have edge_graph sorted -> skip the argsort
        eg_s = eg
        rm_src = rmins_e.astype(jnp.float32)
        ew_src = edge_weight.astype(jnp.float32)
    else:
        order = jnp.argsort(eg)
        eg_s = eg[order]
        rm_src = rmins_e.astype(jnp.float32)[order]
        ew_src = edge_weight.astype(jnp.float32)[order]
    rank = jnp.arange(E, dtype=jnp.int32) - edge_off[eg_s]
    dest = row_off[eg_s] * LANES + rank                          # unique slot per edge

    # fused single scatter of the stacked [E, 2] (rmins, edge_weight) payload;
    # padding slots keep (rmin=0, w=1) so they contribute exactly 0 in the kernel.
    init = jnp.concatenate([jnp.zeros((rp * LANES, 1), jnp.float32),
                            jnp.ones((rp * LANES, 1), jnp.float32)], axis=1)
    slab = init.at[dest].set(jnp.stack([rm_src, ew_src], axis=1))
    rmins2 = slab[:, 0].reshape(rp, LANES)
    ew2 = slab[:, 1].reshape(rp, LANES)

    # packed, resident per-graph slab: pe / offset / n_atoms / row_start / row_end
    pg = jnp.zeros((8, GL), jnp.float32)
    pg = pg.at[2, :].set(1.0)        # n_atoms pad -> 1 (no div-by-zero)
    pg = pg.at[3, :].set(-1.0)       # empty row range for padding lanes
    pg = pg.at[4, :].set(-1.0)
    pg = pg.at[0, :G].set(potential_energy.astype(jnp.float32))
    pg = pg.at[1, :G].set(offsets.astype(jnp.float32))
    pg = pg.at[2, :G].set(n_atoms.astype(jnp.float32))
    pg = pg.at[3, :G].set(row_off.astype(jnp.float32))
    pg = pg.at[4, :G].set((row_off + rows_per_graph).astype(jnp.float32))

    kern = functools.partial(energy_kernel, power=power, energy_ratio=energy_ratio,
                             ljr_ratio=ljr_ratio, normalize=normalize,
                             tiles_per_split=tiles_per_split)

    out = pl.pallas_call(
        kern,
        out_shape=jax.ShapeDtypeStruct((NUM_SPLITS, 8, GL), jnp.float32),
        grid_spec=pltpu.PrefetchScalarGridSpec(
            num_scalar_prefetch=0,
            grid=(NUM_SPLITS, tiles_per_split),
            in_specs=[
                pl.BlockSpec((8, GL), lambda c, t: (0, 0)),            # per-graph slab
                pl.BlockSpec((tr, LANES),
                             lambda c, t: (c * tiles_per_split + t, 0)),  # rmins stream
                pl.BlockSpec((tr, LANES),
                             lambda c, t: (c * tiles_per_split + t, 0)),  # edge_weight
            ],
            out_specs=pl.BlockSpec((1, 8, GL), lambda c, t: (c, 0, 0)),
            scratch_shapes=[pltpu.VMEM((8, GL), jnp.float32)],
        ),
        compiler_params=pltpu.CompilerParams(
            dimension_semantics=("parallel", "arbitrary")),
    )(pg, rmins2, ew2)

    out_sum = jnp.sum(out, axis=0)                               # sum the split partials
    comb = out_sum[0, :G][:, None]
    pen = out_sum[1, :G][:, None]
    ljr = out_sum[2, :G][:, None]
    zeros = jnp.zeros((G, 1), jnp.float32)                       # zero output kept in wrapper
    # TODO(synk): for G >> 128 graphs add a "parallel" axis over GL/128 lane blocks
    # (rebasing gstart/gend per block) and re-derive tile_rows against v7x's 64 MiB VMEM.
    return comb, pen, zeros, ljr


# ------------------------------- glue / driver --------------------------------
def compute_offsets(z, n_atoms_list):
    """set_norm_offset: offset[i] = -sum(element_energy[z_j]) for atoms of graph i."""
    offsets = []
    curr = 0
    for n in n_atoms_list:
        o = 0.0
        for zj in z[curr:curr + n]:
            o -= ELEMENT_ENERGY[int(zj)]
        offsets.append(o)
        curr += n
    return np.array(offsets, dtype=np.float32)


if __name__ == "__main__":
    key = jax.random.PRNGKey(0)
    k1, k2, k3, k4 = jax.random.split(key, 4)

    # synthetic lj_rmins table (stand-in for lj_rmins.npy), symmetric, * ljr_scale
    base = jax.random.uniform(k1, (N_ELEMENTS, N_ELEMENTS), jnp.float32, 1.5, 3.0)
    lj_rmins = LJR_SCALE * 0.5 * (base + base.T)

    # small synthetic graph batch: 2 graphs, 5 + 3 atoms, 16 edges
    n_atoms_list = [5, 3]
    G = len(n_atoms_list)
    N = sum(n_atoms_list)
    z = np.array(jax.random.randint(k2, (N,), 1, 21, jnp.int32))        # atomic numbers 1..20
    batch_vec = np.repeat(np.arange(G), n_atoms_list)                   # atom -> graph

    E = 16
    src = np.concatenate([np.random.RandomState(0).randint(0, 5, 10),
                          5 + np.random.RandomState(1).randint(0, 3, 6)]).astype(np.int32)
    dst = np.concatenate([np.random.RandomState(2).randint(0, 5, 10),
                          5 + np.random.RandomState(3).randint(0, 3, 6)]).astype(np.int32)
    edge_index = np.stack([src, dst])                                   # [2, E]
    edge_weight = np.array(jax.random.uniform(k3, (E,), jnp.float32, 0.8, 3.0))

    potential_energy = np.array(jax.random.normal(k4, (G,), jnp.float32)) * 10.0
    n_atoms = np.array(n_atoms_list, dtype=np.float32)
    offsets = compute_offsets(z, n_atoms_list)

    # glue gathers (data-dependent table lookups kept outside the kernel)
    # TODO(synk): lj_rmins.npy load + z-indexed rmin gather stay host/XLA-side glue.
    lj_np = np.array(lj_rmins)
    rmins_e = lj_np[z[edge_index[0]] - 1, z[edge_index[1]] - 1].astype(np.float32)  # [E]
    edge_graph = batch_vec[edge_index[0]].astype(np.int32)                          # [E]

    comb, pen, zeros, ljr = energy_forward(
        jnp.asarray(potential_energy), jnp.asarray(offsets), jnp.asarray(n_atoms),
        jnp.asarray(rmins_e), jnp.asarray(edge_weight), jnp.asarray(edge_graph))
    jax.block_until_ready((comb, pen, zeros, ljr))

    # pure-numpy reference check
    pen_ref = (potential_energy + offsets) / n_atoms
    rep = np.where(rmins_e <= edge_weight, 1.0, (rmins_e / edge_weight) ** LJR_POWER)
    ljr_ref = np.zeros(G, np.float32)
    np.add.at(ljr_ref, edge_graph, (rep - 1.0).astype(np.float32))
    comb_ref = ENERGY_RATIO * pen_ref + LJR_RATIO * ljr_ref

    assert np.allclose(np.array(pen)[:, 0], pen_ref, rtol=1e-4, atol=1e-4)
    assert np.allclose(np.array(ljr)[:, 0], ljr_ref, rtol=1e-3, atol=1e-3)
    assert np.allclose(np.array(comb)[:, 0], comb_ref, rtol=1e-3, atol=1e-3)
    assert np.all(np.array(zeros) == 0.0)
    print("KERNEL_OK")
</pallas_src>

<mosaic_0001>
module attributes {stable_mosaic.version = 11 : i64} {
  func.func private @main(%arg0: i32) attributes {dimension_semantics = [#tpu.dimension_semantics<core_parallel>], iteration_bounds = array<i64: 2>, tpu.core_type = #tpu.core_type<sc_scalar_subcore>, window_params = []} {
    return
  }
}

module attributes {stable_mosaic.version = 11 : i64} {
  func.func private @main(%arg0: i32) attributes {dimension_semantics = [#tpu.dimension_semantics<core_parallel>], iteration_bounds = array<i64: 2>, tpu.core_type = #tpu.core_type<sc_scalar_subcore>, window_params = []} {
    return
  }
}

module attributes {stable_mosaic.version = 11 : i64} {
  func.func @energy_kernel(%arg0: i32, %arg1: i32, %arg2: memref<8x128xf32, #tpu.memory_space<vmem>>, %arg3: memref<8x128xf32, #tpu.memory_space<vmem>>, %arg4: memref<8x128xf32, #tpu.memory_space<vmem>>, %arg5: memref<1x8x128xf32, #tpu.memory_space<vmem>>, %arg6: memref<8x128xf32, #tpu.memory_space<vmem>>) attributes {dimension_semantics = [#tpu.dimension_semantics<parallel>, #tpu.dimension_semantics<arbitrary>], iteration_bounds = array<i64: 2, 1>, scalar_prefetch = 0 : i64, scratch_operands = 1 : i64, tpu.core_type = #tpu.core_type<tc>, window_params = [{pipeline_mode = #tpu.pipeline_mode<synchronous>, transform_indices = @transform_0, window_bounds = array<i64: 8, 128>}, {transform_indices = @transform_1, window_bounds = array<i64: 8, 128>}, {transform_indices = @transform_2, window_bounds = array<i64: 8, 128>}, {transform_indices = @transform_3, window_bounds = array<i64: 1, 8, 128>}]} {
    %c0_i32 = arith.constant 0 : i32
    %0 = arith.cmpi eq, %arg1, %c0_i32 : i32
    %1 = arith.extui %0 : i1 to i32
    %c0_i32_0 = arith.constant 0 : i32
    %2 = arith.cmpi ne, %1, %c0_i32_0 : i32
    scf.if %2 {
      %cst_16 = arith.constant 0.000000e+00 : f32
      %45 = vector.broadcast %cst_16 : f32 to vector<8x128xf32>
      %c0_17 = arith.constant 0 : index
      %c0_18 = arith.constant 0 : index
      %46 = vector.load %arg6[%c0_17, %c0_18] : memref<8x128xf32, #tpu.memory_space<vmem>>, vector<8x128xf32>
      tpu.vector_store %arg6[%c0_17, %c0_18], %45 {strides = array<i32>} : memref<8x128xf32, #tpu.memory_space<vmem>>, vector<8x128xf32>,
    } else {
    }
    %c0 = arith.constant 0 : index
    %c0_1 = arith.constant 0 : index
    %3 = vector.load %arg3[%c0, %c0_1] : memref<8x128xf32, #tpu.memory_space<vmem>>, vector<8x128xf32>
    %c0_2 = arith.constant 0 : index
    %c0_3 = arith.constant 0 : index
    %4 = vector.load %arg4[%c0_2, %c0_3] : memref<8x128xf32, #tpu.memory_space<vmem>>, vector<8x128xf32>
    %5 = arith.divf %3, %4 : vector<8x128xf32>
    %6 = arith.cmpf ole, %3, %4 : vector<8x128xf32>
    %7 = arith.mulf %5, %5 : vector<8x128xf32>
    %8 = arith.mulf %7, %7 : vector<8x128xf32>
    %9 = arith.mulf %8, %8 : vector<8x128xf32>
    %10 = arith.mulf %8, %9 : vector<8x128xf32>
    %cst = arith.constant 1.000000e+00 : f32
    %11 = vector.broadcast %cst : f32 to vector<8x128xf32>
    %12 = arith.subf %10, %11 : vector<8x128xf32>
    %cst_4 = arith.constant 0.000000e+00 : f32
    %13 = vector.broadcast %cst_4 : f32 to vector<8x128xf32>
    %14 = arith.select %6, %13, %12 : vector<8x128xi1>, vector<8x128xf32>
    %cst_5 = arith.constant dense<0.000000e+00> : vector<8xf32>
    %15 = vector.multi_reduction <add>, %14, %cst_5 [1] : vector<8x128xf32> to vector<8xf32>
    %16 = vector.shape_cast %15 : vector<8xf32> to vector<8x1xf32>
    %c1_i32 = arith.constant 1 : i32
    %17 = arith.muli %arg0, %c1_i32 : i32
    %18 = arith.addi %17, %arg1 : i32
    %c8_i32 = arith.constant 8 : i32
    %19 = arith.muli %18, %c8_i32 : i32
    %20 = tpu.iota {dimensions = array<i32: 0>} : vector<8x1xi32>
    %21 = vector.broadcast %19 : i32 to vector<8x1xi32>
    %22 = arith.addi %21, %20 : vector<8x1xi32>
    %23 = arith.sitofp %22 : vector<8x1xi32> to vector<8x1xf32>
    %c3 = arith.constant 3 : index
    %c0_6 = arith.constant 0 : index
    %24 = vector.load %arg2[%c3, %c0_6] : memref<8x128xf32, #tpu.memory_space<vmem>>, vector<1x128xf32>
    %c4 = arith.constant 4 : index
    %c0_7 = arith.constant 0 : index
    %25 = vector.load %arg2[%c4, %c0_7] : memref<8x128xf32, #tpu.memory_space<vmem>>, vector<1x128xf32>
    %26 = vector.broadcast %23 : vector<8x1xf32> to vector<8x128xf32>
    %27 = vector.broadcast %24 : vector<1x128xf32> to vector<8x128xf32>
    %28 = arith.cmpf oge, %26, %27 : vector<8x128xf32>
    %29 = vector.broadcast %23 : vector<8x1xf32> to vector<8x128xf32>
    %30 = vector.broadcast %25 : vector<1x128xf32> to vector<8x128xf32>
    %31 = arith.cmpf olt, %29, %30 : vector<8x128xf32>
    %32 = arith.andi %28, %31 : vector<8x128xi1>
    %cst_8 = arith.constant 0.000000e+00 : f32
    %33 = vector.shape_cast %16 : vector<8x1xf32> to vector<8x1xf32>
    %34 = vector.broadcast %33 : vector<8x1xf32> to vector<8x128xf32>
    %35 = vector.broadcast %cst_8 : f32 to vector<8x128xf32>
    %36 = arith.select %32, %34, %35 : vector<8x128xi1>, vector<8x128xf32>
    %c0_9 = arith.constant 0 : index
    %c0_10 = arith.constant 0 : index
    %37 = vector.load %arg6[%c0_9, %c0_10] : memref<8x128xf32, #tpu.memory_space<vmem>>, vector<8x128xf32>
    %38 = vector.shape_cast %36 : vector<8x128xf32> to vector<1x8x128xf32>
    %cst_11 = arith.constant dense<0.000000e+00> : vector<8x128xf32>
    %39 = vector.multi_reduction <add>, %38, %cst_11 [0] : vector<1x8x128xf32> to vector<8x128xf32>
    %40 = arith.addf %37, %39 : vector<8x128xf32>
    %c0_12 = arith.constant 0 : index
    %c0_13 = arith.constant 0 : index
    %41 = vector.load %arg6[%c0_12, %c0_13] : memref<8x128xf32, #tpu.memory_space<vmem>>, vector<8x128xf32>
    tpu.vector_store %arg6[%c0_12, %c0_13], %40 {strides = array<i32>} : memref<8x128xf32, #tpu.memory_space<vmem>>, vector<8x128xf32>,
    %c0_i32_14 = arith.constant 0 : i32
    %42 = arith.cmpi eq, %arg1, %c0_i32_14 : i32
    %43 = arith.extui %42 : i1 to i32
    %c0_i32_15 = arith.constant 0 : i32
    %44 = arith.cmpi ne, %43, %c0_i32_15 : i32
    scf.if %44 {
      %c0_16 = arith.constant 0 : index
      %c0_17 = arith.constant 0 : index
      %45 = vector.load %arg6[%c0_16, %c0_17] : memref<8x128xf32, #tpu.memory_space<vmem>>, vector<8x128xf32>
      %cst_18 = arith.constant dense<0.000000e+00> : vector<128xf32>
      %46 = vector.multi_reduction <add>, %45, %cst_18 [0] : vector<8x128xf32> to vector<128xf32>
      %47 = vector.shape_cast %46 : vector<128xf32> to vector<1x128xf32>
      %c0_19 = arith.constant 0 : index
      %c0_20 = arith.constant 0 : index
      %48 = vector.load %arg2[%c0_19, %c0_20] : memref<8x128xf32, #tpu.memory_space<vmem>>, vector<1x128xf32>
      %c1 = arith.constant 1 : index
      %c0_21 = arith.constant 0 : index
      %49 = vector.load %arg2[%c1, %c0_21] : memref<8x128xf32, #tpu.memory_space<vmem>>, vector<1x128xf32>
      %c2 = arith.constant 2 : index
      %c0_22 = arith.constant 0 : index
      %50 = vector.load %arg2[%c2, %c0_22] : memref<8x128xf32, #tpu.memory_space<vmem>>, vector<1x128xf32>
      %51 = arith.addf %48, %49 : vector<1x128xf32>
      %52 = arith.divf %51, %50 : vector<1x128xf32>
      %c0_i32_23 = arith.constant 0 : i32
      %53 = arith.cmpi eq, %arg0, %c0_i32_23 : i32
      %cst_24 = arith.constant 0.000000e+00 : f32
      %54 = vector.broadcast %cst_24 : f32 to vector<1x128xf32>
      %55 = arith.select %53, %52, %54 : vector<1x128xf32>
      %cst_25 = arith.constant 1.000000e+00 : f32
      %56 = vector.broadcast %cst_25 : f32 to vector<1x128xf32>
      %57 = arith.mulf %56, %55 : vector<1x128xf32>
      %cst_26 = arith.constant 1.000000e+00 : f32
      %58 = vector.broadcast %cst_26 : f32 to vector<1x128xf32>
      %59 = arith.mulf %58, %47 : vector<1x128xf32>
      %60 = arith.addf %57, %59 : vector<1x128xf32>
      %cst_27 = arith.constant 0.000000e+00 : f32
      %61 = vector.broadcast %cst_27 : f32 to vector<5x128xf32>
      %62 = tpu.concatenate %60, %55, %47, %61 in 0 : vector<1x128xf32>, vector<1x128xf32>, vector<1x128xf32>, vector<5x128xf32> -> vector<8x128xf32>
      %63 = vector.shape_cast %62 : vector<8x128xf32> to vector<1x8x128xf32>
      %c0_28 = arith.constant 0 : index
      %c0_29 = arith.constant 0 : index
      %c0_30 = arith.constant 0 : index
      %64 = vector.load %arg5[%c0_28, %c0_29, %c0_30] : memref<1x8x128xf32, #tpu.memory_space<vmem>>, vector<1x8x128xf32>
      tpu.vector_store %arg5[%c0_28, %c0_29, %c0_30], %63 {strides = array<i32>} : memref<1x8x128xf32, #tpu.memory_space<vmem>>, vector<1x8x128xf32>,
    } else {
    }
    return
  }
  func.func @transform_0(%arg0: i32, %arg1: i32) -> (i32, i32) {
    %c0_i32 = arith.constant 0 : i32
    %c0_i32_0 = arith.constant 0 : i32
    %c0_i32_1 = arith.constant 0 : i32
    return %c0_i32, %c0_i32_0 : i32, i32
  }
  func.func @transform_1(%arg0: i32, %arg1: i32) -> (i32, i32) {
    %c1_i32 = arith.constant 1 : i32
    %0 = arith.muli %arg0, %c1_i32 : i32
    %1 = arith.addi %0, %arg1 : i32
    %c0_i32 = arith.constant 0 : i32
    %c0_i32_0 = arith.constant 0 : i32
    return %1, %c0_i32 : i32, i32
  }
  func.func @transform_2(%arg0: i32, %arg1: i32) -> (i32, i32) {
    %c1_i32 = arith.constant 1 : i32
    %0 = arith.muli %arg0, %c1_i32 : i32
    %1 = arith.addi %0, %arg1 : i32
    %c0_i32 = arith.constant 0 : i32
    %c0_i32_0 = arith.constant 0 : i32
    return %1, %c0_i32 : i32, i32
  }
  func.func @transform_3(%arg0: i32, %arg1: i32) -> (i32, i32, i32) {
    %c0_i32 = arith.constant 0 : i32
    %c0_i32_0 = arith.constant 0 : i32
    %c0_i32_1 = arith.constant 0 : i32
    return %arg0, %c0_i32, %c0_i32_0 : i32, i32, i32
  }
}

</mosaic_0001>

<bundles_post_ra>
// kernel: energy_forward.1
= control target key start
LH: loop header
LB: loop body
LE: loop exit
PB: predicated region body
PF: predicated region fallthrough
CT: control target
= control target key end

     0   :  { %s443_s12 = smov 0   ;;  %s445_s13 = smov 0   ;;  %s505_s0 = inlined_call_operand.vmem [shape: f32[8,128], index: 0, kind: input, shape index: {}]   ;;  %s506_s1 = inlined_call_operand.vmem [shape: f32[16,128], index: 1, kind: input, shape index: {}]   ;;  %s507_s2 = inlined_call_operand.vmem [shape: f32[16,128], index: 2, kind: input, shape index: {}]   ;;  %s508_s3 = inlined_call_operand.vmem [shape: f32[2,8,128], index: 3, kind: output, shape index: {}]  }
   0x1   :  { %s447_s14 = smov 0  }
   0x2 LB: > { %s25_s15 = sadd.s32 1, %s417_s13  ;;  %p361_p0 = scmp.ge.s32.totalorder %s421_s14, 1  ;;  %s421_s14 = sphi %s447_s14, %s13_s14   ;;  %s417_s13 = sphi %s445_s13, %s510_s13   ;;  %s413_s12 = sphi %s443_s12, %s509_s12  }
   0x3   : > { %p27_p1 = scmp.ge.s32.totalorder %s25_s15, 2  ;;  %p165_p2 = scmp.lt.s32.totalorder %s421_s14, 3 }
   0x5   : > { %s512_s15 = smov (%p27_p1, %s25_s15), 0  ;;  %p166_p3 = pnand %p361_p0, %p165_p2 }
   0x6   : > { %p194_p4 = scmp.lt.s32.totalorder (!%p166_p3), %s413_s12, 1  ;;  %v229_v10 = vlaneseq (!%p166_p3)  ;;  %s366_s24 = sshll.u32 (!%p166_p3), %s413_s12, 3  ;;  %v264_v14 = vld [vmem:[%s505_s0 + $0x2] sm:$0x1] (!%p166_p3)  ;;  %v367_v16 = vld [vmem:[%s505_s0 + $0x3] ss:$0 sm:$0xff] (!%p166_p3) }
   0x7   : > { %169 = sbr.rel (%p166_p3) target bundleno = 204 (0xcc), region = 32  ;;  %v231_v12 = vstv (!%p166_p3), %s366_s24  ;;  %v368_v17 = vld [vmem:[%s505_s0 + $0x4] ss:$0 sm:$0xff] (!%p166_p3)  ;;  %p268_p5 = scmp.eq.s32.totalorder (!%p166_p3), %s413_s12, 0  ;;  %v262_v18 = vld [vmem:[%s505_s0] sm:$0x1] (!%p166_p3) }
   0x8   : > { %v230_v11 = vshrl.u32 (!%p166_p3), %v229_v10, 7  ;;  %v263_v19 = vld [vmem:[%s505_s0 + $0x1] sm:$0x1] (!%p166_p3)  ;;  %vm277_vm5 = vcmask (!%p166_p3), 1040384   ;;  %vm279_vm6 = vcmask (!%p166_p3), 1041408   ;;  %vm281_vm7 = vcmask (!%p166_p3), 1042432  }
   0x9   : > { %v265_v22 = vadd.f32 (!%p166_p3), %v263_v19, %v262_v18 }
   0xa   : > { %v232_v13 = vadd.s32 (!%p166_p3), %v231_v12, %v230_v11 }
   0xc   : > { %v233_v15 = vcvt.s32.f32 (!%p166_p3), %v232_v13 }
   0xe   : > { %s195_s16 = scalar_select %p194_p4, %s413_s12, 1  ;;  %vm240_vm1 = vcmp.ge.f32.partialorder %v233_v15, %v367_v16  ;;  %vm245_vm2 = vcmp.lt.f32.partialorder %v233_v15, %v368_v17 }
   0xf   : > { %vm246_vm3 = vmand %vm240_vm1, %vm245_vm2  ;;  %s269_s8 = scalar_select %p268_p5, 1, 0 }
  0x10   : > { %s465_s17 = sshll.u32 %s195_s16, 3 }
  0x11   : > { %s203_s20 = scalar_lea.vmem %s507_s2, %s465_s17  ;;  %s197_s23 = scalar_lea.vmem %s506_s1, %s465_s17  ;;  %v270_v25 = vstv %s269_s8 }
  0x12   : > { %v215_v0 = vld [vmem:[%s203_s20] sm:$0xff]  ;;  %vm271_vm4 = vcmp.eq.s32.totalorder %v270_v25, 1  ;;  %s208_s11 = scalar_lea.vmem %s508_s3, %s465_s17 }
  0x13   : > { %395 = vrcp.f32 %v215_v0  ;;  %v214_v1 = vld [vmem:[%s197_s23] sm:$0xff] }
  0x14   : > { %vm218_vm0 = vcmp.le.f32.partialorder %v214_v1, %v215_v0  ;;  %397 = vrcp.f32 %v264_v14 }
  0x1d   : > { %v396_v2 = vpop.eup %395 }
  0x1e   : > { %v217_v3 = vmul.f32 %v396_v2, %v214_v1  ;;  %v398_v23 = vpop.eup %397 }
  0x1f   : > { %v267_v27 = vmul.f32 %v398_v23, %v265_v22 }
  0x20   : > { %v219_v4 = vmul.f32 %v217_v3, %v217_v3 }
  0x21   : > { %v272_v30 = vsel %vm271_vm4, %v267_v27, 0.0 }
  0x22   : > { %v220_v5 = vmul.f32 %v219_v4, %v219_v4  ;;  %v275_v33 = vrot.slane %v272_v30, 7 }
  0x24   : > { %v221_v6 = vmul.f32 %v220_v5, %v220_v5 }
  0x26   : > { %v222_v7 = vmul.f32 %v221_v6, %v220_v5 }
  0x28   : > { %v365_v8 = vadd.f32 -1.0, %v222_v7 }
  0x2a   : > { %v224_v9 = vsel %vm218_vm0, 0.0, %v365_v8 }
  0x2b   : > { %225 = vadd.xlane.f32.xlu0 %v224_v9 }
  0xb8   : > { %v226_v20 = vpop.xlane.xlu0 %225 }
  0xb9   : > { %v247_v21 = vsel %vm246_vm3, %v226_v20, 0.0 }
  0xba   : > { %v256_v24 = vrot.slane %v247_v21, 4 }
  0xbc   : > { %v257_v26 = vadd.f32 %v256_v24, %v247_v21 }
  0xbe   : > { %v258_v28 = vrot.slane %v257_v26, 2 }
  0xc0   : > { %v259_v29 = vadd.f32 %v258_v28, %v257_v26 }
  0xc2   : > { %v260_v31 = vrot.slane %v259_v29, 1 }
  0xc4   : > { %v261_v32 = vadd.f32 %v260_v31, %v259_v29 }
  0xc6   : > { %v273_v34 = vadd.f32 %v272_v30, %v261_v32 }
  0xc8   : > { %v278_v35 = vsel %vm277_vm5, %v273_v34, %v275_v33 }
  0xc9   : > { %v280_v36 = vsel %vm279_vm6, %v278_v35, %v261_v32 }
  0xca   : > { %v282_v37 = vsel %vm281_vm7, %v280_v36, 0.0 }
  0xcb   : > { %283 = vst [vmem:[%s208_s11] sm:$0xff] %v282_v37 }
  0xcc PF: > { %s13_s14 = sadd.s32 1, %s421_s14   ;;  %s509_s12 = smov %s417_s13 }
  0xcd   : > { %p10_p6 = scmp.ge.s32.totalorder %s13_s14, 4   ;;  %s510_s13 = smov %s512_s15 }
  0xcf   :  { %12 = sbr.rel (!%p10_p6) target bundleno = 2 (0x2), region = 73 }

</bundles_post_ra>
